<compile_context>
chip_gen: v6e
topology: v6e:2x2x1
jax: 0.10.0
libtpu: 0.0.40
codegen_flags: <defaults>
</compile_context>

<pallas_src>
import functools

import jax
import jax.numpy as jnp
from jax.experimental import pallas as pl
from jax.experimental.pallas import tpu as pltpu


def _round_up(x, m):
    return ((x + m - 1) // m) * m


def _round_down_mult(x, m):
    return (x // m) * m


def _default_vmem_budget_bytes():
    """Pipeline VMEM budget: <= half of physical VMEM, capped at 64 MiB.

    v5e/v6e (128 MiB physical) -> 64 MiB; v7x (64 MiB physical) -> 32 MiB.
    Falls back to a v7x-safe 32 MiB if the hardware query is unavailable.
    """
    try:
        phys = int(pltpu.get_tpu_info().vmem_capacity_bytes)
    except Exception:
        phys = 64 << 20
    return min(phys // 2, 64 << 20)


def _pick_row_tile(M, E, in_bytes, out_bytes, vmem_budget):
    # Per-row VMEM footprint: 2x input (double-buffered) + 2x output
    # (double-buffered) + 4 bytes headroom for the f32 temporary.
    per_row = E * (2 * in_bytes + 2 * out_bytes + 4)
    tm = max(8, _round_down_mult(max(per_row, vmem_budget) // per_row, 8))
    tm = min(tm, 1024)                    # amortization sweet spot cap
    tm = min(tm, _round_up(M, 8))         # never exceed the data
    # Keep at least ~8 grid steps when there is enough work: pipelining +
    # megacore sharding (>= 2 steps per TensorCore on v7x).
    min_steps = 8
    if M > 8 * min_steps:
        tm = min(tm, max(8, _round_up(pl.cdiv(M, min_steps), 8)))
    return max(8, tm)


def _rmsnorm_kernel(x_ref, w_ref, o_ref, *, eps):
    # (tm, E) tile; full feature dim on lanes.  All math in f32, normalized
    # value cast back to the activation dtype before the weight multiply
    # (matches torch: _norm(x.float()).type_as(x) * weight).
    x = x_ref[...].astype(jnp.float32)
    ms = jnp.mean(x * x, axis=-1, keepdims=True)
    normed = (x * jax.lax.rsqrt(ms + eps)).astype(o_ref.dtype)
    o_ref[...] = normed * w_ref[...].astype(o_ref.dtype)


def rmsnorm(x, weight, eps=1e-6, vmem_budget_bytes=None):
    """RMSNorm over the last axis of `x` (any number of leading dims)."""
    orig_shape = x.shape
    E = orig_shape[-1]
    x2 = x.reshape(-1, E)
    M = x2.shape[0]

    if vmem_budget_bytes is None:
        vmem_budget_bytes = _default_vmem_budget_bytes()

    in_bytes = jnp.dtype(x.dtype).itemsize
    out_bytes = in_bytes
    tm = _pick_row_tile(M, E, in_bytes, out_bytes, vmem_budget_bytes)

    grid = (pl.cdiv(M, tm),)   # partial last block handled by masked writeback

    out = pl.pallas_call(
        functools.partial(_rmsnorm_kernel, eps=eps),
        out_shape=jax.ShapeDtypeStruct((M, E), x.dtype),
        grid=grid,
        in_specs=[
            pl.BlockSpec((tm, E), lambda i: (i, 0)),   # row tile, full E on lanes
            pl.BlockSpec((1, E), lambda i: (0, 0)),    # weight, resident block
        ],
        out_specs=pl.BlockSpec((tm, E), lambda i: (i, 0)),
        compiler_params=pltpu.CompilerParams(
            dimension_semantics=("parallel",),          # rows independent -> megacore
            vmem_limit_bytes=int(vmem_budget_bytes),
        ),
    )(x2, weight.reshape(1, E))

    return out.reshape(orig_shape)


def rmsnorm_reference(x, weight, eps=1e-6):
    # Mirrors the torch module: normalize in f32, cast to x.dtype, then * weight.
    xf = x.astype(jnp.float32)
    ms = jnp.mean(xf * xf, axis=-1, keepdims=True)
    normed = (xf * jax.lax.rsqrt(ms + eps)).astype(x.dtype)
    return normed * weight.astype(x.dtype)


if __name__ == "__main__":
    key = jax.random.PRNGKey(0)
    k1, k2, k3, k4 = jax.random.split(key, 4)

    # Case 1: shape implied by the module spec (B=2, S=8, dim=32); single block.
    x_a = jax.random.normal(k1, (2, 8, 32), jnp.float32)
    w_a = 1.0 + 0.1 * jax.random.normal(k2, (32,), jnp.float32)
    out_a = jax.block_until_ready(rmsnorm(x_a, w_a))
    ref_a = rmsnorm_reference(x_a, w_a)
    assert out_a.shape == x_a.shape
    assert bool(jnp.isfinite(out_a).all())
    assert bool(jnp.allclose(out_a, ref_a, atol=1e-5, rtol=1e-5))

    # Case 2: non-divisible row count (M=74), lane-dense E=128, multi-step grid
    # -> exercises the no-pad partial-last-block path and multi-step pipeline.
    x_b = jax.random.normal(k3, (2, 37, 128), jnp.float32)
    w_b = 1.0 + 0.05 * jax.random.normal(k4, (128,), jnp.float32)
    out_b = jax.block_until_ready(rmsnorm(x_b, w_b))
    ref_b = rmsnorm_reference(x_b, w_b)
    assert out_b.shape == x_b.shape
    assert bool(jnp.isfinite(out_b).all())
    assert bool(jnp.allclose(out_b, ref_b, atol=1e-5, rtol=1e-5))

    # Case 3: bf16 activations/weight (llama-style mixed precision), small shape.
    x_c = jax.random.normal(k1, (2, 8, 256), jnp.float32).astype(jnp.bfloat16)
    w_c = jnp.ones((256,), jnp.bfloat16)
    out_c = jax.block_until_ready(rmsnorm(x_c, w_c))
    ref_c = rmsnorm_reference(x_c, w_c)
    assert out_c.shape == x_c.shape and out_c.dtype == jnp.bfloat16
    assert bool(jnp.isfinite(out_c.astype(jnp.float32)).all())
    assert bool(jnp.allclose(out_c.astype(jnp.float32),
                             ref_c.astype(jnp.float32), atol=2e-2, rtol=2e-2))

    print("KERNEL_OK")
</pallas_src>

<mosaic_0001>
module attributes {stable_mosaic.version = 11 : i64} {
  func.func @_rmsnorm_kernel(%arg0: i32, %arg1: memref<16x32xf32, #tpu.memory_space<vmem>>, %arg2: memref<1x32xf32, #tpu.memory_space<vmem>>, %arg3: memref<16x32xf32, #tpu.memory_space<vmem>>) attributes {dimension_semantics = [#tpu.dimension_semantics<parallel>], iteration_bounds = array<i64: 1>, scalar_prefetch = 0 : i64, scratch_operands = 0 : i64, tpu.core_type = #tpu.core_type<tc>, window_params = [{transform_indices = @transform_0, window_bounds = array<i64: 16, 32>}, {pipeline_mode = #tpu.pipeline_mode<synchronous>, transform_indices = @transform_1, window_bounds = array<i64: 1, 32>}, {transform_indices = @transform_2, window_bounds = array<i64: 16, 32>}]} {
    %c0 = arith.constant 0 : index
    %c0_0 = arith.constant 0 : index
    %0 = vector.load %arg1[%c0, %c0_0] : memref<16x32xf32, #tpu.memory_space<vmem>>, vector<16x32xf32>
    %1 = arith.mulf %0, %0 : vector<16x32xf32>
    %cst = arith.constant dense<0.000000e+00> : vector<16xf32>
    %2 = vector.multi_reduction <add>, %1, %cst [1] : vector<16x32xf32> to vector<16xf32>
    %3 = vector.shape_cast %2 : vector<16xf32> to vector<16x1xf32>
    %cst_1 = arith.constant 3.200000e+01 : f32
    %4 = vector.broadcast %cst_1 : f32 to vector<16x1xf32>
    %5 = arith.divf %3, %4 : vector<16x1xf32>
    %cst_2 = arith.constant 9.99999997E-7 : f32
    %6 = vector.broadcast %cst_2 : f32 to vector<16x1xf32>
    %7 = arith.addf %5, %6 : vector<16x1xf32>
    %8 = math.rsqrt %7 : vector<16x1xf32>
    %9 = vector.broadcast %8 : vector<16x1xf32> to vector<16x32xf32>
    %10 = arith.mulf %0, %9 : vector<16x32xf32>
    %c0_3 = arith.constant 0 : index
    %c0_4 = arith.constant 0 : index
    %11 = vector.load %arg2[%c0_3, %c0_4] : memref<1x32xf32, #tpu.memory_space<vmem>>, vector<1x32xf32>
    %12 = vector.broadcast %11 : vector<1x32xf32> to vector<16x32xf32>
    %13 = arith.mulf %10, %12 : vector<16x32xf32>
    %c0_5 = arith.constant 0 : index
    %c0_6 = arith.constant 0 : index
    %14 = vector.load %arg3[%c0_5, %c0_6] : memref<16x32xf32, #tpu.memory_space<vmem>>, vector<16x32xf32>
    tpu.vector_store %arg3[%c0_5, %c0_6], %13 {strides = array<i32>} : memref<16x32xf32, #tpu.memory_space<vmem>>, vector<16x32xf32>,
    return
  }
  func.func @transform_0(%arg0: i32) -> (i32, i32) {
    %c0_i32 = arith.constant 0 : i32
    %c0_i32_0 = arith.constant 0 : i32
    return %arg0, %c0_i32 : i32, i32
  }
  func.func @transform_1(%arg0: i32) -> (i32, i32) {
    %c0_i32 = arith.constant 0 : i32
    %c0_i32_0 = arith.constant 0 : i32
    %c0_i32_1 = arith.constant 0 : i32
    return %c0_i32, %c0_i32_0 : i32, i32
  }
  func.func @transform_2(%arg0: i32) -> (i32, i32) {
    %c0_i32 = arith.constant 0 : i32
    %c0_i32_0 = arith.constant 0 : i32
    return %arg0, %c0_i32 : i32, i32
  }
}

</mosaic_0001>

<bundles_post_ra>
// kernel: tpu_custom_call.1
= control target key start
LH: loop header
LB: loop body
LE: loop exit
PB: predicated region body
PF: predicated region fallthrough
CT: control target
= control target key end

     0   :  { %7 = vsyncpa [#allocation3], 0  ;;  %s165_s0 = inlined_call_operand.hbm [shape: f32[16,32], index: 0, kind: input, shape index: {}]   ;;  %s166_s1 = inlined_call_operand.vmem [shape: f32[1,32], index: 1, kind: input, shape index: {}]   ;;  %s167_s2 = inlined_call_operand.hbm [shape: f32[16,32], index: 2, kind: output, shape index: {}]  }
   0x1   :  { %8 = vsyncpa [#allocation4], 0  ;;  %s127_s9 = smov [#allocation2]  }
   0x2   :  { %s14_s10 = sshll.u32 %s127_s9, 4  ;;  %s15_s10 = int_to_ptr.vmem [resolvable:$true] %s14_s10 }
   0x3   :  { %s91_s11 = scalar_lea.vmem %s15_s10, 256  ;;  %p96_p1 = scmp.lt.s32.totalorder %s15_s10, %s15_s10 }
   0x4   :  { %p92_p0 = scmp.ne.s32.totalorder %s15_s10, %s91_s11  ;;  %p97_p2 = scmp.lt.s32.totalorder %s91_s11, %s91_s11 }
   0x6   :  { %p98_p3 = por %p97_p2, %p96_p1 }
   0x8   :  { %p99_p4 = pnand %p98_p3, %p92_p0 }
   0xa   :  { %102 = shalt.err (!%p99_p4)
}
   0xb   :  { %s128_s12 = smov 128   ;;  %s129_s13 = smov 8  }
   0xc   :  { %20 = dma.hbm_to_vmem [thread:$0]  %s165_s0, 256, %s15_s10, [#allocation3], %s128_s12, %s128_s12, %s129_s13  }
   0xd   :  { %123 = dma.done.wait [#allocation3], 256  }
   0xe   :  { %124 = vsyncadd [#allocation3], 4294967040  ;;  %v26_v0 = vld [vmem:[#allocation2] sm:$0xff]  ;;  %vm30_vm0 = vcmask 261120   ;;  %v27_v1 = vld [vmem:[#allocation2 + $0x8] sm:$0xff]  ;;  %s130_s17 = smov [#allocation5]  }
   0xf   :  { %v28_v2 = vmul.f32 %v26_v0, %v26_v0  ;;  %v29_v3 = vmul.f32 %v27_v1, %v27_v1  ;;  %v74_v13 = vld [vmem:[%s166_s1] ss:$0 sm:$0xff]  ;;  %s62_s18 = sshll.u32 %s130_s17, 4  ;;  %s63_s18 = int_to_ptr.vmem [resolvable:$true] %s62_s18 }
  0x10   :  { %s103_s19 = scalar_lea.vmem %s63_s18, 256  ;;  %p108_p6 = scmp.lt.s32.totalorder %s63_s18, %s63_s18 }
  0x11   :  { %v31_v4 = vsel %vm30_vm0, %v28_v2, 0.0  ;;  %v34_v5 = vsel %vm30_vm0, %v29_v3, 0.0  ;;  %p104_p5 = scmp.ne.s32.totalorder %s63_s18, %s103_s19  ;;  %p109_p7 = scmp.lt.s32.totalorder %s103_s19, %s103_s19 }
  0x12   :  { %32 = vadd.xlane.f32.xlu0 %v31_v4 }
  0x13   :  { %p110_p8 = por %p109_p7, %p108_p6 }
  0x15   :  { %p111_p9 = pnand %p110_p8, %p104_p5 }
  0x16   :  { %35 = vadd.xlane.f32.xlu0 %v34_v5 }
  0x9b   :  { %v33_v6 = vpop.xlane.xlu0 %32 }
  0x9c   :  { %v38_v7 = vmul.f32 0.03125, %v33_v6 }
  0x9e   :  { %v40_v8 = vadd.f32 1e-06, %v38_v7 }
  0x9f   :  { %v36_v9 = vpop.xlane.xlu0 %35 }
  0xa0   :  { %79 = vrsqrt.f32 %v40_v8  ;;  %v39_v10 = vmul.f32 0.03125, %v36_v9 }
  0xa2   :  { %v41_v11 = vadd.f32 1e-06, %v39_v10 }
  0xa4   :  { %81 = vrsqrt.f32 %v41_v11 }
  0xad   :  { %v80_v12 = vpop.eup %79 }
  0xae   :  { %v44_v14 = vmul.f32 %v80_v12, %v26_v0 }
  0xb0   :  { %v53_v15 = vmul.f32 %v74_v13, %v44_v14 }
  0xb1   :  { %v82_v16 = vpop.eup %81 }
  0xb2   :  { %v45_v17 = vmul.f32 %v82_v16, %v27_v1  ;;  %55 = vst.msk [vmem:[#allocation5] sm:$0xff] %vm30_vm0, %v53_v15 }
  0xb4   :  { %v54_v18 = vmul.f32 %v74_v13, %v45_v17 }
  0xb6   :  { %56 = vst.msk [vmem:[#allocation5 + $0x8] sm:$0xff] %vm30_vm0, %v54_v18 }
  0xb7   :  { %114 = shalt.err (!%p111_p9)
}
  0xb8   :  { %68 = dma.vmem_to_hbm [thread:$0]  %s63_s18, 256, %s167_s2, [#allocation4], %s128_s12, %s128_s12, %s129_s13  }
  0xb9   :  { %125 = dma.done.wait [#allocation4], 256  }
  0xba   :  { %126 = vsyncadd [#allocation4], 4294967040 }
  0xbb   :  { %72 = vsyncpa [#allocation3], 1 }
  0xbc   :  { %73 = vsyncpa [#allocation4], 1 }

</bundles_post_ra>
